<compile_context>
chip_gen: v7x
topology: tpu7x:2x2x1
jax: 0.10.0
libtpu: 0.0.40
codegen_flags: <defaults>
</compile_context>

<pallas_src>
import jax
import jax.numpy as jnp
from jax.experimental import pallas as pl
from jax.experimental.pallas import tpu as pltpu

HIDDEN = 128


def _round_up(x, m):
    return ((x + m - 1) // m) * m


def _criticq_kernel(s_ref, a_ref, w1s_ref, w1a_ref, b1_ref,
                    w2_ref, b2_ref, w3_ref, b3_ref, o_ref):
    """One batch tile, computed feature-major so the output row is lane-dense.

    s_ref: [tb, S] f32      a_ref: [tb, A] f32
    w1s_ref: [H, S] bf16    w1a_ref: [H, A] bf16    b1_ref: [H, 1] f32
    w2_ref:  [H, H] bf16                            b2_ref: [H, 1] f32
    w3_ref:  [H, 1] f32                             b3_ref: [1, 1] f32
    o_ref:   [1, tb] f32
    """
    # Transpose the narrow inputs in-kernel (XLU work, stays in VMEM; no extra
    # HBM transpose) so all activations are feature-major [H, tb]: the batch
    # sits on lanes, every intermediate is lane-dense and the output is a
    # lane-dense [1, tb] row.
    s_t = jnp.transpose(s_ref[...]).astype(jnp.bfloat16)   # [S, tb]
    a_t = jnp.transpose(a_ref[...]).astype(jnp.bfloat16)   # [A, tb]

    # Layer 1: fused "concat" matmul (state half + action half), bf16 operands,
    # f32 accumulation on the MXU.  Bias add / ReLU stay f32.
    h1 = (jnp.dot(w1s_ref[...], s_t, preferred_element_type=jnp.float32)
          + jnp.dot(w1a_ref[...], a_t, preferred_element_type=jnp.float32)
          + b1_ref[...])
    h1 = jnp.maximum(h1, 0.0)

    # Layer 2: [H, H] x [H, tb] bf16 matmul, f32 accumulate.
    h2 = jnp.dot(w2_ref[...], h1.astype(jnp.bfloat16),
                 preferred_element_type=jnp.float32) + b2_ref[...]
    h2 = jnp.maximum(h2, 0.0)

    # Layer 3 (128 -> 1): VPU broadcast-multiply + sublane reduction instead of
    # a 1-column MXU pass; result is already the lane-dense [1, tb] output row.
    q = jnp.sum(h2 * w3_ref[...], axis=0, keepdims=True) + b3_ref[...]
    o_ref[...] = q.astype(o_ref.dtype)


def _choose_batch_tile(batch, block_b):
    """Balanced batch tiling.

    - tile rows are a multiple of 8 (sublanes); multiple of 128 when the grid
      has more than one step (lane-dense (1, tb) output blocks),
    - tiles are sized as cdiv(B, n_tiles) so awkward batch sizes don't pad up
      to a full extra tile,
    - batches > 128 always split into >= 2 grid steps so the "parallel" batch
      axis can be sharded across v7x's two TensorCores.
    """
    block_b = max(128, _round_up(block_b, 128))
    if batch <= 128:
        tb = _round_up(max(batch, 1), 8)      # single tile; tb == padded batch
        return tb, 1
    n_tiles = max(2, pl.cdiv(batch, block_b))
    tb = min(_round_up(pl.cdiv(batch, n_tiles), 128), block_b)
    n_tiles = pl.cdiv(batch, tb)
    return tb, n_tiles


def criticq_forward(state, action, params, *, block_b=4096):
    """Pallas wrapper. state: [B, S], action: [B, A] -> q: [B, 1] (f32)."""
    w1s_t, w1a_t, b1_c, w2_t, b2_c, w3_c, b3_c = params

    B, S = state.shape
    A = action.shape[1]

    tb, n_tiles = _choose_batch_tile(B, block_b)
    b_pad = tb * n_tiles
    if b_pad != B:
        state = jnp.pad(state, ((0, b_pad - B), (0, 0)))
        action = jnp.pad(action, ((0, b_pad - B), (0, 0)))

    full = lambda i: (0, 0)      # weights / biases: resident, fetched once
    tile = lambda i: (i, 0)      # batch-tiled inputs
    out_tile = lambda i: (0, i)  # lane-dense [1, tb] output row per step

    out = pl.pallas_call(
        _criticq_kernel,
        out_shape=jax.ShapeDtypeStruct((1, b_pad), jnp.float32),
        grid_spec=pltpu.PrefetchScalarGridSpec(
            num_scalar_prefetch=0,
            grid=(n_tiles,),
            in_specs=[
                pl.BlockSpec((tb, S), tile),           # state tile
                pl.BlockSpec((tb, A), tile),           # action tile
                pl.BlockSpec((HIDDEN, S), full),       # w1^T state half (bf16)
                pl.BlockSpec((HIDDEN, A), full),       # w1^T action half (bf16)
                pl.BlockSpec((HIDDEN, 1), full),       # b1
                pl.BlockSpec((HIDDEN, HIDDEN), full),  # w2^T (bf16)
                pl.BlockSpec((HIDDEN, 1), full),       # b2
                pl.BlockSpec((HIDDEN, 1), full),       # w3 column (f32)
                pl.BlockSpec((1, 1), full),            # b3
            ],
            out_specs=pl.BlockSpec((1, tb), out_tile),
        ),
        compiler_params=pltpu.CompilerParams(
            dimension_semantics=("parallel",),
            vmem_limit_bytes=48 * 1024 * 1024,
        ),
    )(state, action, w1s_t, w1a_t, b1_c, w2_t, b2_c, w3_c, b3_c)

    # Padded rows carry garbage (relu(b1)-propagated values); slice them off.
    return out[0, :B].reshape(B, 1)


def init_params(key, state_dim, action_dim, *, matmul_dtype=jnp.bfloat16):
    """Deterministic init mirroring nn.Linear's U(-1/sqrt(fan_in), 1/sqrt(fan_in)).

    Weights are stored feature-major ([out, in], i.e. torch layout) and in
    bf16 for the MXU; biases and the final 128->1 vector stay f32.
    """
    def linear(key, fan_in, fan_out):
        kw, kb = jax.random.split(key)
        bound = 1.0 / jnp.sqrt(fan_in)
        w = jax.random.uniform(kw, (fan_in, fan_out), jnp.float32, -bound, bound)
        b = jax.random.uniform(kb, (fan_out,), jnp.float32, -bound, bound)
        return w, b

    k1, k2, k3 = jax.random.split(key, 3)
    w1, b1 = linear(k1, state_dim + action_dim, HIDDEN)
    w2, b2 = linear(k2, HIDDEN, HIDDEN)
    w3, b3 = linear(k3, HIDDEN, 1)

    # Split w1 consistent with torch.cat((state, action), -1): state rows first.
    w1s_t = jnp.asarray(w1[:state_dim].T, matmul_dtype)   # [H, S]
    w1a_t = jnp.asarray(w1[state_dim:].T, matmul_dtype)   # [H, A]
    w2_t = jnp.asarray(w2.T, matmul_dtype)                # [H, H]
    b1_c = b1.reshape(HIDDEN, 1)
    b2_c = b2.reshape(HIDDEN, 1)
    w3_c = w3.reshape(HIDDEN, 1)                          # f32 column
    b3_c = b3.reshape(1, 1)
    return (w1s_t, w1a_t, b1_c, w2_t, b2_c, w3_c, b3_c)


def criticq_reference(state, action, params):
    """Pure-JAX reference of the torch forward (built from the stored params)."""
    w1s_t, w1a_t, b1_c, w2_t, b2_c, w3_c, b3_c = params
    w1 = jnp.concatenate([w1s_t.astype(jnp.float32).T,
                          w1a_t.astype(jnp.float32).T], axis=0)  # [S+A, H]
    w2 = w2_t.astype(jnp.float32).T                              # [H, H]
    x = jnp.concatenate([state, action], axis=-1)
    h1 = jnp.maximum(x @ w1 + b1_c[:, 0], 0.0)
    h2 = jnp.maximum(h1 @ w2 + b2_c[:, 0], 0.0)
    return h2 @ w3_c + b3_c[0]


if __name__ == "__main__":
    key = jax.random.PRNGKey(0)
    k_params, k_state, k_action = jax.random.split(key, 3)

    B, STATE_DIM, ACTION_DIM = 2, 8, 4

    params = init_params(k_params, STATE_DIM, ACTION_DIM)
    state = jax.random.normal(k_state, (B, STATE_DIM), jnp.float32)
    action = jax.random.normal(k_action, (B, ACTION_DIM), jnp.float32)

    q = criticq_forward(state, action, params)
    jax.block_until_ready(q)

    q_ref = criticq_reference(state, action, params)
    assert q.shape == (B, 1)
    # bf16 matmul operands with f32 accumulation: ~1e-3 relative error vs the
    # f32 reference is expected (accepted speed/parity trade-off).
    assert jnp.allclose(q, q_ref, atol=2e-2, rtol=2e-2), (q, q_ref)

    print("KERNEL_OK")
</pallas_src>

<mosaic_0001>
module attributes {stable_mosaic.version = 11 : i64} {
  func.func @_criticq_kernel(%arg0: i32, %arg1: memref<8x8xf32, #tpu.memory_space<vmem>>, %arg2: memref<8x4xf32, #tpu.memory_space<vmem>>, %arg3: memref<128x8xbf16, #tpu.memory_space<vmem>>, %arg4: memref<128x4xbf16, #tpu.memory_space<vmem>>, %arg5: memref<128x1xf32, #tpu.memory_space<vmem>>, %arg6: memref<128x128xbf16, #tpu.memory_space<vmem>>, %arg7: memref<128x1xf32, #tpu.memory_space<vmem>>, %arg8: memref<128x1xf32, #tpu.memory_space<vmem>>, %arg9: memref<1x1xf32, #tpu.memory_space<vmem>>, %arg10: memref<1x8xf32, #tpu.memory_space<vmem>>) attributes {dimension_semantics = [#tpu.dimension_semantics<parallel>], iteration_bounds = array<i64: 1>, scalar_prefetch = 0 : i64, scratch_operands = 0 : i64, tpu.core_type = #tpu.core_type<tc>, window_params = [{transform_indices = @transform_0, window_bounds = array<i64: 8, 8>}, {transform_indices = @transform_1, window_bounds = array<i64: 8, 4>}, {pipeline_mode = #tpu.pipeline_mode<synchronous>, transform_indices = @transform_2, window_bounds = array<i64: 128, 8>}, {pipeline_mode = #tpu.pipeline_mode<synchronous>, transform_indices = @transform_3, window_bounds = array<i64: 128, 4>}, {pipeline_mode = #tpu.pipeline_mode<synchronous>, transform_indices = @transform_4, window_bounds = array<i64: 128, 1>}, {pipeline_mode = #tpu.pipeline_mode<synchronous>, transform_indices = @transform_5, window_bounds = array<i64: 128, 128>}, {pipeline_mode = #tpu.pipeline_mode<synchronous>, transform_indices = @transform_6, window_bounds = array<i64: 128, 1>}, {pipeline_mode = #tpu.pipeline_mode<synchronous>, transform_indices = @transform_7, window_bounds = array<i64: 128, 1>}, {pipeline_mode = #tpu.pipeline_mode<synchronous>, transform_indices = @transform_8, window_bounds = array<i64: 1, 1>}, {transform_indices = @transform_9, window_bounds = array<i64: 1, 8>}]} {
    %c0 = arith.constant 0 : index
    %c0_0 = arith.constant 0 : index
    %0 = vector.load %arg1[%c0, %c0_0] : memref<8x8xf32, #tpu.memory_space<vmem>>, vector<8x8xf32>
    %1 = tpu.transpose %0, [1, 0] : vector<8x8xf32> -> vector<8x8xf32>
    %2 = arith.truncf %1 : vector<8x8xf32> to vector<8x8xbf16>
    %c0_1 = arith.constant 0 : index
    %c0_2 = arith.constant 0 : index
    %3 = vector.load %arg2[%c0_1, %c0_2] : memref<8x4xf32, #tpu.memory_space<vmem>>, vector<8x4xf32>
    %4 = tpu.transpose %3, [1, 0] : vector<8x4xf32> -> vector<4x8xf32>
    %5 = arith.truncf %4 : vector<4x8xf32> to vector<4x8xbf16>
    %c0_3 = arith.constant 0 : index
    %c0_4 = arith.constant 0 : index
    %6 = vector.load %arg3[%c0_3, %c0_4] : memref<128x8xbf16, #tpu.memory_space<vmem>>, vector<128x8xbf16>
    %cst = arith.constant dense<0.000000e+00> : vector<128x8xf32>
    %7 = tpu.matmul %6, %2, %cst {dimension_numbers = #tpu.dot_dimension_numbers<[1], [0], [0], [1], [0, 0, 1, 1], [], []>} : vector<128x8xbf16>, vector<8x8xbf16>, vector<128x8xf32> -> vector<128x8xf32>
    %c0_5 = arith.constant 0 : index
    %c0_6 = arith.constant 0 : index
    %8 = vector.load %arg4[%c0_5, %c0_6] : memref<128x4xbf16, #tpu.memory_space<vmem>>, vector<128x4xbf16>
    %cst_7 = arith.constant dense<0.000000e+00> : vector<128x8xf32>
    %9 = tpu.matmul %8, %5, %cst_7 {dimension_numbers = #tpu.dot_dimension_numbers<[1], [0], [0], [1], [0, 0, 1, 1], [], []>} : vector<128x4xbf16>, vector<4x8xbf16>, vector<128x8xf32> -> vector<128x8xf32>
    %10 = arith.addf %7, %9 : vector<128x8xf32>
    %c0_8 = arith.constant 0 : index
    %c0_9 = arith.constant 0 : index
    %11 = vector.load %arg5[%c0_8, %c0_9] : memref<128x1xf32, #tpu.memory_space<vmem>>, vector<128x1xf32>
    %12 = vector.broadcast %11 : vector<128x1xf32> to vector<128x8xf32>
    %13 = arith.addf %10, %12 : vector<128x8xf32>
    %cst_10 = arith.constant 0.000000e+00 : f32
    %14 = vector.broadcast %cst_10 : f32 to vector<128x8xf32>
    %15 = arith.maximumf %13, %14 : vector<128x8xf32>
    %c0_11 = arith.constant 0 : index
    %c0_12 = arith.constant 0 : index
    %16 = vector.load %arg6[%c0_11, %c0_12] : memref<128x128xbf16, #tpu.memory_space<vmem>>, vector<128x128xbf16>
    %17 = arith.truncf %15 : vector<128x8xf32> to vector<128x8xbf16>
    %cst_13 = arith.constant dense<0.000000e+00> : vector<128x8xf32>
    %18 = tpu.matmul %16, %17, %cst_13 {dimension_numbers = #tpu.dot_dimension_numbers<[1], [0], [0], [1], [0, 0, 1, 1], [], []>} : vector<128x128xbf16>, vector<128x8xbf16>, vector<128x8xf32> -> vector<128x8xf32>
    %c0_14 = arith.constant 0 : index
    %c0_15 = arith.constant 0 : index
    %19 = vector.load %arg7[%c0_14, %c0_15] : memref<128x1xf32, #tpu.memory_space<vmem>>, vector<128x1xf32>
    %20 = vector.broadcast %19 : vector<128x1xf32> to vector<128x8xf32>
    %21 = arith.addf %18, %20 : vector<128x8xf32>
    %cst_16 = arith.constant 0.000000e+00 : f32
    %22 = vector.broadcast %cst_16 : f32 to vector<128x8xf32>
    %23 = arith.maximumf %21, %22 : vector<128x8xf32>
    %c0_17 = arith.constant 0 : index
    %c0_18 = arith.constant 0 : index
    %24 = vector.load %arg8[%c0_17, %c0_18] : memref<128x1xf32, #tpu.memory_space<vmem>>, vector<128x1xf32>
    %25 = vector.broadcast %24 : vector<128x1xf32> to vector<128x8xf32>
    %26 = arith.mulf %23, %25 : vector<128x8xf32>
    %cst_19 = arith.constant dense<0.000000e+00> : vector<8xf32>
    %27 = vector.multi_reduction <add>, %26, %cst_19 [0] : vector<128x8xf32> to vector<8xf32>
    %28 = vector.shape_cast %27 : vector<8xf32> to vector<1x8xf32>
    %c0_20 = arith.constant 0 : index
    %c0_21 = arith.constant 0 : index
    %29 = vector.load %arg9[%c0_20, %c0_21] : memref<1x1xf32, #tpu.memory_space<vmem>>, vector<1x1xf32>
    %30 = vector.broadcast %29 : vector<1x1xf32> to vector<1x8xf32>
    %31 = arith.addf %28, %30 : vector<1x8xf32>
    %c0_22 = arith.constant 0 : index
    %c0_23 = arith.constant 0 : index
    %32 = vector.load %arg10[%c0_22, %c0_23] : memref<1x8xf32, #tpu.memory_space<vmem>>, vector<1x8xf32>
    tpu.vector_store %arg10[%c0_22, %c0_23], %31 {strides = array<i32>} : memref<1x8xf32, #tpu.memory_space<vmem>>, vector<1x8xf32>,
    return
  }
  func.func @transform_0(%arg0: i32) -> (i32, i32) {
    %c0_i32 = arith.constant 0 : i32
    %c0_i32_0 = arith.constant 0 : i32
    return %arg0, %c0_i32 : i32, i32
  }
  func.func @transform_1(%arg0: i32) -> (i32, i32) {
    %c0_i32 = arith.constant 0 : i32
    %c0_i32_0 = arith.constant 0 : i32
    return %arg0, %c0_i32 : i32, i32
  }
  func.func @transform_2(%arg0: i32) -> (i32, i32) {
    %c0_i32 = arith.constant 0 : i32
    %c0_i32_0 = arith.constant 0 : i32
    %c0_i32_1 = arith.constant 0 : i32
    return %c0_i32, %c0_i32_0 : i32, i32
  }
  func.func @transform_3(%arg0: i32) -> (i32, i32) {
    %c0_i32 = arith.constant 0 : i32
    %c0_i32_0 = arith.constant 0 : i32
    %c0_i32_1 = arith.constant 0 : i32
    return %c0_i32, %c0_i32_0 : i32, i32
  }
  func.func @transform_4(%arg0: i32) -> (i32, i32) {
    %c0_i32 = arith.constant 0 : i32
    %c0_i32_0 = arith.constant 0 : i32
    %c0_i32_1 = arith.constant 0 : i32
    return %c0_i32, %c0_i32_0 : i32, i32
  }
  func.func @transform_5(%arg0: i32) -> (i32, i32) {
    %c0_i32 = arith.constant 0 : i32
    %c0_i32_0 = arith.constant 0 : i32
    %c0_i32_1 = arith.constant 0 : i32
    return %c0_i32, %c0_i32_0 : i32, i32
  }
  func.func @transform_6(%arg0: i32) -> (i32, i32) {
    %c0_i32 = arith.constant 0 : i32
    %c0_i32_0 = arith.constant 0 : i32
    %c0_i32_1 = arith.constant 0 : i32
    return %c0_i32, %c0_i32_0 : i32, i32
  }
  func.func @transform_7(%arg0: i32) -> (i32, i32) {
    %c0_i32 = arith.constant 0 : i32
    %c0_i32_0 = arith.constant 0 : i32
    %c0_i32_1 = arith.constant 0 : i32
    return %c0_i32, %c0_i32_0 : i32, i32
  }
  func.func @transform_8(%arg0: i32) -> (i32, i32) {
    %c0_i32 = arith.constant 0 : i32
    %c0_i32_0 = arith.constant 0 : i32
    %c0_i32_1 = arith.constant 0 : i32
    return %c0_i32, %c0_i32_0 : i32, i32
  }
  func.func @transform_9(%arg0: i32) -> (i32, i32) {
    %c0_i32 = arith.constant 0 : i32
    %c0_i32_0 = arith.constant 0 : i32
    return %c0_i32, %arg0 : i32, i32
  }
}

</mosaic_0001>

<bundles_post_ra>
// kernel: tpu_custom_call.1
= control target key start
LH: loop header
LB: loop body
LE: loop exit
PB: predicated region body
PF: predicated region fallthrough
CT: control target
= control target key end

     0   :  { %s1599_s0 = inlined_call_operand.vmem [shape: f32[8,8], index: 0, kind: input, shape index: {}]   ;;  %s1600_s1 = inlined_call_operand.vmem [shape: f32[8,4], index: 1, kind: input, shape index: {}]   ;;  %s1601_s2 = inlined_call_operand.vmem [shape: bf16[128,8], index: 2, kind: input, shape index: {}]   ;;  %s1602_s3 = inlined_call_operand.vmem [shape: bf16[128,4], index: 3, kind: input, shape index: {}]   ;;  %s1603_s4 = inlined_call_operand.vmem [shape: f32[128,1], index: 4, kind: input, shape index: {}]   ;;  %s1604_s5 = inlined_call_operand.vmem [shape: bf16[128,128], index: 5, kind: input, shape index: {}]   ;;  %s1605_s6 = inlined_call_operand.vmem [shape: f32[128,1], index: 6, kind: input, shape index: {}]   ;;  %s1606_s7 = inlined_call_operand.vmem [shape: f32[128,1], index: 7, kind: input, shape index: {}]   ;;  %s1607_s8 = inlined_call_operand.<no memory space> [shape: f32[1,1], index: 8, kind: input, shape index: {}]   ;;  %s1608_s9 = inlined_call_operand.hbm [shape: f32[1,8], index: 9, kind: output, shape index: {}]  }
   0x1   :  { %v14_v0 = vstv %s1607_s8 }
   0x2   :  { %15 = vst [vmem:[#allocation2] sm:$0x1] %v14_v0 }
   0x3   :  { %v70_v1 = vld [vmem:[%s1600_s1] sm:$0xff]  ;;  %v1266_v4 = vmov 0   ;;  %v469_v5 = vld [vmem:[%s1603_s4 + $0x8] sm:$0xff]  ;;  %v471_v7 = vld [vmem:[%s1603_s4 + $0x18] sm:$0xff]  ;;  %vm176_vm0 = vcmask 31744  }
   0x4   :  { %v468_v2 = vld [vmem:[%s1603_s4] sm:$0xff]  ;;  %71 = vxpose.xlu0.b32.start.end [1/1] (short) (narrow) %v70_v1, 8  ;;  %1216 = vset.pattern.permute.xlu1 %v1266_v4  ;;  %v473_v9 = vld [vmem:[%s1603_s4 + $0x28] sm:$0xff]  ;;  %v474_v10 = vld [vmem:[%s1603_s4 + $0x30] sm:$0xff] }
   0x5   :  { %v36_v3 = vld [vmem:[%s1599_s0] sm:$0xff]  ;;  %486 = vperm.xlu1 %1216, %v468_v2  }
   0x6   :  { %v1218_v6 = vld [vmem:[%s1602_s3] sm:$0xff]  }
   0x7   :  { %1129 = vmatprep.mubr.msk.bf16.mxu0 %vm176_vm0, %v1218_v6  ;;  %v472_v8 = vld [vmem:[%s1603_s4 + $0x20] sm:$0xff] }
   0x8   :  { %37 = vxpose.xlu0.b32.start.end [1/1] (short) (narrow) %v36_v3, 8 }
   0x9   :  { %491 = vperm.xlu1 %1216, %v469_v5  }
   0xd   :  { %501 = vperm.xlu1 %1216, %v471_v7  }
  0x11   :  { %506 = vperm.xlu1 %1216, %v472_v8  }
  0x15   :  { %511 = vperm.xlu1 %1216, %v473_v9  }
  0x19   :  { %516 = vperm.xlu1 %1216, %v474_v10  }
  0x1a   :  { %16 = vsyncpa [#allocation4], 0  ;;  %v475_v11 = vld [vmem:[%s1603_s4 + $0x38] sm:$0xff]  ;;  %v476_v12 = vld [vmem:[%s1603_s4 + $0x40] sm:$0xff]  ;;  %vm201_vm1 = vcmask 1041408   ;;  %vm367_vm2 = vcmask 1043456  }
  0x1b   :  { %v477_v13 = vld [vmem:[%s1603_s4 + $0x48] sm:$0xff]  ;;  %v478_v14 = vld [vmem:[%s1603_s4 + $0x50] sm:$0xff]  ;;  %v479_v15 = vld [vmem:[%s1603_s4 + $0x58] sm:$0xff]  ;;  %vm342_vm3 = vcmask 64512   ;;  %vm1037_vm4 = vcmask 57344  }
  0x1c   :  { %v480_v16 = vld [vmem:[%s1603_s4 + $0x60] sm:$0xff]  ;;  %v481_v17 = vld [vmem:[%s1603_s4 + $0x68] sm:$0xff]  ;;  %v483_v18 = vld [vmem:[%s1603_s4 + $0x78] sm:$0xff] }
  0x1d   :  { %521 = vperm.xlu1 %1216, %v475_v11   ;;  %v621_v19 = vld [vmem:[%s1605_s6 + $0x8] sm:$0xff]  ;;  %v470_v20 = vld [vmem:[%s1603_s4 + $0x10] sm:$0xff]  ;;  %v623_v22 = vld [vmem:[%s1605_s6 + $0x18] sm:$0xff] }
  0x1e   :  { %v482_v21 = vld [vmem:[%s1603_s4 + $0x70] sm:$0xff]  ;;  %v877_v23 = vld [vmem:[%s1606_s7] sm:$0xff]  ;;  %v880_v28 = vld [vmem:[%s1606_s7 + $0x18] sm:$0xff] }
  0x1f   :  { %v620_v24 = vld [vmem:[%s1605_s6] sm:$0xff]  ;;  %v622_v25 = vld [vmem:[%s1605_s6 + $0x10] sm:$0xff]  ;;  %v878_v29 = vld [vmem:[%s1606_s7 + $0x8] sm:$0xff] }
  0x20   :  { %v879_v26 = vld [vmem:[%s1606_s7 + $0x10] sm:$0xff]  ;;  %v624_v27 = vld [vmem:[%s1605_s6 + $0x20] sm:$0xff]  ;;  %v625_v31 = vld [vmem:[%s1605_s6 + $0x28] sm:$0xff] }
  0x21   :  { %526 = vperm.xlu1 %1216, %v476_v12   ;;  %v881_v30 = vld [vmem:[%s1606_s7 + $0x20] sm:$0xff]  ;;  %v882_v32 = vld [vmem:[%s1606_s7 + $0x28] sm:$0xff]  ;;  %v626_v33 = vld [vmem:[%s1605_s6 + $0x30] sm:$0xff] }
  0x22   :  { %v883_v34 = vld [vmem:[%s1606_s7 + $0x30] sm:$0xff]  ;;  %v627_v35 = vld [vmem:[%s1605_s6 + $0x38] sm:$0xff]  ;;  %v628_v37 = vld [vmem:[%s1605_s6 + $0x40] sm:$0xff] }
  0x23   :  { %v884_v36 = vld [vmem:[%s1606_s7 + $0x38] sm:$0xff]  ;;  %v885_v38 = vld [vmem:[%s1606_s7 + $0x40] sm:$0xff]  ;;  %v629_v39 = vld [vmem:[%s1605_s6 + $0x48] sm:$0xff] }
  0x24   :  { %v886_v40 = vld [vmem:[%s1606_s7 + $0x48] sm:$0xff]  ;;  %v630_v41 = vld [vmem:[%s1605_s6 + $0x50] sm:$0xff]  ;;  %v631_v43 = vld [vmem:[%s1605_s6 + $0x58] sm:$0xff] }
  0x25   :  { %531 = vperm.xlu1 %1216, %v477_v13   ;;  %v887_v42 = vld [vmem:[%s1606_s7 + $0x50] sm:$0xff]  ;;  %v888_v44 = vld [vmem:[%s1606_s7 + $0x58] sm:$0xff]  ;;  %v632_v45 = vld [vmem:[%s1605_s6 + $0x60] sm:$0xff] }
  0x26   :  { %v889_v46 = vld [vmem:[%s1606_s7 + $0x60] sm:$0xff]  ;;  %v633_v47 = vld [vmem:[%s1605_s6 + $0x68] sm:$0xff]  ;;  %v634_v49 = vld [vmem:[%s1605_s6 + $0x70] sm:$0xff] }
  0x27   :  { %v890_v48 = vld [vmem:[%s1606_s7 + $0x68] sm:$0xff]  ;;  %v892_v50 = vld [vmem:[%s1606_s7 + $0x78] sm:$0xff]  ;;  %v891_v52 = vld [vmem:[%s1606_s7 + $0x70] sm:$0xff] }
  0x28   :  { %v635_v51 = vld [vmem:[%s1605_s6 + $0x78] sm:$0xff]  ;;  %v1026_v53 = vld [vmem:[#allocation2] sm:$0x1]  ;;  %v1219_v57 = vld [vmem:[%s1602_s3 + $0x8] sm:$0xff]  }
  0x29   :  { %536 = vperm.xlu1 %1216, %v478_v14   ;;  %v1220_v59 = vld [vmem:[%s1602_s3 + $0x10] sm:$0xff]   ;;  %v1221_v62 = vld [vmem:[%s1602_s3 + $0x18] sm:$0xff]   ;;  %v1222_v63 = vld [vmem:[%s1602_s3 + $0x20] sm:$0xff]  }
  0x2a   :  { %v1223_v0 = vld [vmem:[%s1602_s3 + $0x28] sm:$0xff]   ;;  %v1224_v1 = vld [vmem:[%s1602_s3 + $0x30] sm:$0xff]   ;;  %v1225_v2 = vld [vmem:[%s1602_s3 + $0x38] sm:$0xff]  }
  0x2b   :  { %v1226_v3 = vld [vmem:[%s1601_s2] sm:$0xff]   ;;  %v1228_v5 = vld [vmem:[%s1601_s2 + $0x10] sm:$0xff]   ;;  %v1229_v6 = vld [vmem:[%s1601_s2 + $0x18] sm:$0xff]  }
  0x2c   :  { %v1230_v7 = vld [vmem:[%s1601_s2 + $0x20] sm:$0xff]   ;;  %v1231_v8 = vld [vmem:[%s1601_s2 + $0x28] sm:$0xff]   ;;  %v1232_v9 = vld [vmem:[%s1601_s2 + $0x30] sm:$0xff]  }
  0x2d   :  { %541 = vperm.xlu1 %1216, %v479_v15   ;;  %v1233_v10 = vld [vmem:[%s1601_s2 + $0x38] sm:$0xff]   ;;  %v1234_v11 = vld [vmem:[%s1604_s5] sm:$0xff]  }
  0x2e   :  { %1179 = vmatprep.mubr.bf16.mxu1 %v1234_v11 }
  0x31   :  { %546 = vperm.xlu1 %1216, %v480_v16   ;;  %1217 = vset.pattern.permute.xlu0 %v1266_v4  ;;  %v1227_v4 = vld [vmem:[%s1601_s2 + $0x8] sm:$0xff]  }
  0x32   :  { %496 = vperm.xlu0 %1217, %v470_v20  }
  0x35   :  { %551 = vperm.xlu1 %1216, %v481_v17  }
  0x36   :  { %556 = vperm.xlu0 %1217, %v482_v21  }
  0x39   :  { %561 = vperm.xlu1 %1216, %v483_v18  }
  0x3a   :  { %638 = vperm.xlu0 %1217, %v620_v24  }
  0x3d   :  { %643 = vperm.xlu1 %1216, %v621_v19  }
  0x3e   :  { %648 = vperm.xlu0 %1217, %v622_v25  }
  0x41   :  { %653 = vperm.xlu1 %1216, %v623_v22  }
  0x42   :  { %658 = vperm.xlu0 %1217, %v624_v27  }
  0x45   :  { %895 = vperm.xlu1 %1216, %v877_v23  }
  0x46   :  { %900 = vperm.xlu0 %1217, %v878_v29  }
  0x49   :  { %905 = vperm.xlu1 %1216, %v879_v26  }
  0x4a   :  { %663 = vperm.xlu0 %1217, %v625_v31  }
  0x4d   :  { %910 = vperm.xlu1 %1216, %v880_v28  }
  0x4e   :  { %668 = vperm.xlu0 %1217, %v626_v33  }
  0x51   :  { %915 = vperm.xlu1 %1216, %v881_v30  }
  0x52   :  { %673 = vperm.xlu0 %1217, %v627_v35  }
  0x55   :  { %920 = vperm.xlu1 %1216, %v882_v32  }
  0x56   :  { %678 = vperm.xlu0 %1217, %v628_v37  }
  0x59   :  { %925 = vperm.xlu1 %1216, %v883_v34  }
  0x5a   :  { %683 = vperm.xlu0 %1217, %v629_v39  }
  0x5d   :  { %930 = vperm.xlu1 %1216, %v884_v36  }
  0x5e   :  { %688 = vperm.xlu0 %1217, %v630_v41  }
  0x61   :  { %935 = vperm.xlu1 %1216, %v885_v38  }
  0x62   :  { %693 = vperm.xlu0 %1217, %v631_v43  }
  0x65   :  { %940 = vperm.xlu1 %1216, %v886_v40  }
  0x66   :  { %698 = vperm.xlu0 %1217, %v632_v45  }
  0x69   :  { %945 = vperm.xlu1 %1216, %v887_v42  }
  0x6a   :  { %703 = vperm.xlu0 %1217, %v633_v47  }
  0x6d   :  { %950 = vperm.xlu1 %1216, %v888_v44  }
  0x6e   :  { %708 = vperm.xlu0 %1217, %v634_v49  }
  0x71   :  { %955 = vperm.xlu1 %1216, %v889_v46  }
  0x72   :  { %713 = vperm.xlu0 %1217, %v635_v51  }
  0x75   :  { %960 = vperm.xlu1 %1216, %v890_v48  }
  0x76   :  { %965 = vperm.xlu0 %1217, %v891_v52  }
  0x79   :  { %970 = vperm.xlu1 %1216, %v892_v50  }
  0x7a   :  { %1029 = vperm.xlu0 %1217, %v1026_v53  }
  0x84   :  { %v87_v54 = vpop.trf.xlu0  ;;  %v487_v12 = vpop.permute.xlu1 %486 }
  0x85   :  { %v103_v55 = vpack.c.bf16 %v87_v54, %v87_v54 }
  0x87   :  { %1211 = vmatprep.subr.msk.bf16.mxu0 %vm201_vm1, %v103_v55  ;;  %v203_v56 = vsel %vm201_vm1, %v103_v55, 0 }
  0x88   :  { %1128 = vmatpush3.bf16.msra.mxu0 %v203_v56  ;;  %v53_v58 = vpop.trf.xlu0  ;;  %v492_v13 = vpop.permute.xlu1 %491 }
  0x89   :  { %v69_v60 = vpack.c.bf16 %v53_v58, %v53_v58 }
  0x8b   :  { %v369_v61 = vsel %vm367_vm2, %v69_v60, 0  ;;  %1130 = vmatmul.mubr.msk.bf16.vlgmr.msra.gmra.mrb[0].mxu0 %vm176_vm0, %v1219_v57  ;;  %1212 = vmatprep.subr.msk.bf16.mxu0 %vm367_vm2, %v69_v60 }
  0x8c   :  { %1146 = vmatpush3.bf16.msra.mxu0 %v369_v61  ;;  %1133 = vmatprep.mubr.msk.bf16.mxu0 %vm176_vm0, %v1220_v59  ;;  %v502_v14 = vpop.permute.xlu1 %501 }
  0x90   :  { %v507_v15 = vpop.permute.xlu1 %506 }
  0x93   :  { %1134 = vmatmul.mubr.msk.bf16.gmra.mrb[4].mxu0 %vm176_vm0, %v1221_v62 }
  0x94   :  { %1137 = vmatprep.mubr.msk.bf16.mxu0 %vm176_vm0, %v1222_v63  ;;  %v512_v16 = vpop.permute.xlu1 %511 }
  0x98   :  { %v517_v17 = vpop.permute.xlu1 %516 }
  0x9b   :  { %1138 = vmatmul.mubr.msk.bf16.gmra.mrb[8].mxu0 %vm176_vm0, %v1223_v0 }
  0x9c   :  { %1141 = vmatprep.mubr.msk.bf16.mxu0 %vm176_vm0, %v1224_v1  ;;  %v522_v18 = vpop.permute.xlu1 %521 }
  0xa0   :  { %v527_v19 = vpop.permute.xlu1 %526 }
  0xa3   :  { %1142 = vmatmul.mubr.msk.bf16.gmra.mrb[12].mxu0 %vm176_vm0, %v1225_v2 }
  0xa4   :  { %1147 = vmatprep.mubr.msk.bf16.mxu0 %vm342_vm3, %v1226_v3  ;;  %v532_v20 = vpop.permute.xlu1 %531 }
  0xa8   :  { %v537_v25 = vpop.permute.xlu1 %536 }
  0xab   :  { %1148 = vmatmul.mubr.msk.bf16.vlgmr.msra.gmra.mrb[0].mxu0 %vm342_vm3, %v1227_v4 }
  0xac   :  { %1151 = vmatprep.mubr.msk.bf16.mxu0 %vm342_vm3, %v1228_v5  ;;  %v542_v36 = vpop.permute.xlu1 %541 }
  0xb0   :  { %v547_v48 = vpop.permute.xlu1 %546 }
  0xb1   :  { %v497_v21 = vpop.permute.xlu0 %496 }
  0xb3   :  { %1152 = vmatmul.mubr.msk.bf16.gmra.mrb[4].mxu0 %vm342_vm3, %v1229_v6 }
  0xb4   :  { %1155 = vmatprep.mubr.msk.bf16.mxu0 %vm342_vm3, %v1230_v7  ;;  %v552_v60 = vpop.permute.xlu1 %551 }
  0xb5   :  { %v557_v3 = vpop.permute.xlu0 %556 }
  0xbb   :  { %1156 = vmatmul.mubr.msk.bf16.gmra.mrb[8].mxu0 %vm342_vm3, %v1231_v8  ;;  %v562_v8 = vpop.permute.xlu1 %561 }
  0xbc   :  { %1159 = vmatprep.mubr.msk.bf16.mxu0 %vm342_vm3, %v1232_v9 }
  0xc3   :  { %1160 = vmatmul.mubr.msk.bf16.gmra.mrb[12].mxu0 %vm342_vm3, %v1233_v10 }
 0x17e   :  { %v1149_v22 = vpop.f32.mrb[0].mxu0 }
 0x17f   :  { %v566_v23 = vadd.f32 %v1149_v22, %v497_v21  ;;  %v405_v24 = vpop.f32.mrb[1].mxu0  ;;  %v1236_v21 = vld [vmem:[%s1604_s5 + $0x10] sm:$0xff]   ;;  %v1237_v22 = vld [vmem:[%s1604_s5 + $0x18] sm:$0xff]  }
 0x180   :  { %v564_v26 = vadd.f32 %v487_v12, %v405_v24  ;;  %v1150_v27 = vpop.f32.mrb[2].mxu0  ;;  %v1239_v24 = vld [vmem:[%s1604_s5 + $0x28] sm:$0xff]  }
 0x181   :  { %v567_v28 = vadd.f32 %v1150_v27, %v502_v14  ;;  %v408_v29 = vpop.f32.mrb[3].mxu0  ;;  %v582_v31 = vmax.f32 %v566_v23, 0.0  ;;  %v1238_v23 = vld [vmem:[%s1604_s5 + $0x20] sm:$0xff]   ;;  %v639_v27 = vpop.permute.xlu0 %638 }
 0x182   :  { %v565_v30 = vadd.f32 %v492_v13, %v408_v29  ;;  %v580_v33 = vmax.f32 %v564_v26, 0.0  ;;  %v1241_v26 = vld [vmem:[%s1604_s5 + $0x38] sm:$0xff]  }
 0x183   :  { %v583_v32 = vmax.f32 %v567_v28, 0.0  ;;  %v644_v28 = vpop.permute.xlu1 %643 }
 0x184   :  { %v581_v34 = vmax.f32 %v565_v30, 0.0 }
 0x185   :  { %v613_v35 = vpack.c.bf16 %v583_v32, %v582_v31  ;;  %v649_v29 = vpop.permute.xlu0 %648 }
 0x186   :  { %v1153_v37 = vpop.f32.mrb[4].mxu0  ;;  %v612_v38 = vpack.c.bf16 %v581_v34, %v580_v33 }
 0x187   :  { %v570_v39 = vadd.f32 %v1153_v37, %v517_v17  ;;  %v421_v40 = vpop.f32.mrb[5].mxu0  ;;  %v654_v30 = vpop.permute.xlu1 %653 }
 0x188   :  { %v568_v41 = vadd.f32 %v507_v15, %v421_v40  ;;  %v1154_v42 = vpop.f32.mrb[6].mxu0  ;;  %1163 = vmatprep.subr.bf16.mxu1 %v612_v38 }
 0x189   :  { %v571_v43 = vadd.f32 %v1154_v42, %v522_v18  ;;  %v424_v44 = vpop.f32.mrb[7].mxu0  ;;  %1164 = vmatpush3.bf16.msra.mxu1 %v612_v38  ;;  %v586_v46 = vmax.f32 %v570_v39, 0.0  ;;  %v659_v31 = vpop.permute.xlu0 %658 }
 0x18a   :  { %v569_v45 = vadd.f32 %v512_v16, %v424_v44  ;;  %1165 = vmatprep.subr.bf16.mxu1 %v613_v35  ;;  %v584_v49 = vmax.f32 %v568_v41, 0.0 }
 0x18b   :  { %v587_v47 = vmax.f32 %v571_v43, 0.0  ;;  %v896_v32 = vpop.permute.xlu1 %895 }
 0x18c   :  { %v585_v50 = vmax.f32 %v569_v45, 0.0 }
 0x18d   :  { %v615_v51 = vpack.c.bf16 %v587_v47, %v586_v46  ;;  %1166 = vmatpush3.bf16.msra.mxu1 %v613_v35  ;;  %v901_v33 = vpop.permute.xlu0 %900 }
 0x18e   :  { %v614_v52 = vpack.c.bf16 %v585_v50, %v584_v49  ;;  %v1157_v53 = vpop.f32.mrb[8].mxu0 }
 0x18f   :  { %v574_v54 = vadd.f32 %v1157_v53, %v537_v25  ;;  %v437_v55 = vpop.f32.mrb[9].mxu0  ;;  %v1240_v25 = vld [vmem:[%s1604_s5 + $0x30] sm:$0xff]   ;;  %v906_v34 = vpop.permute.xlu1 %905 }
 0x190   :  { %v572_v56 = vadd.f32 %v527_v19, %v437_v55  ;;  %v1158_v57 = vpop.f32.mrb[10].mxu0  ;;  %1167 = vmatprep.subr.bf16.mxu1 %v614_v52 }
 0x191   :  { %v575_v58 = vadd.f32 %v1158_v57, %v542_v36  ;;  %v440_v59 = vpop.f32.mrb[11].mxu0  ;;  %1168 = vmatpush3.bf16.msra.mxu1 %v614_v52  ;;  %v590_v62 = vmax.f32 %v574_v54, 0.0  ;;  %v664_v35 = vpop.permute.xlu0 %663 }
 0x192   :  { %v573_v61 = vadd.f32 %v532_v20, %v440_v59  ;;  %1169 = vmatprep.subr.bf16.mxu1 %v615_v51  ;;  %v588_v0 = vmax.f32 %v572_v56, 0.0  ;;  %v1235_v20 = vld [vmem:[%s1604_s5 + $0x8] sm:$0xff]   ;;  %s1267_s5 = smov [#allocation3]  }
 0x193   :  { %v591_v63 = vmax.f32 %v575_v58, 0.0  ;;  %v911_v36 = vpop.permute.xlu1 %910  ;;  %s1045_s26 = sshll.u32 %s1267_s5, 4  ;;  %s1046_s26 = int_to_ptr.vmem [resolvable:$true] %s1045_s26 }
 0x194   :  { %v589_v1 = vmax.f32 %v573_v61, 0.0  ;;  %s1242_s27 = scalar_lea.vmem %s1046_s26, 16  ;;  %s1246_s28 = scalar_lea.vmem %s1046_s26, 32 }
 0x195   :  { %v617_v2 = vpack.c.bf16 %v591_v63, %v590_v62  ;;  %1170 = vmatpush3.bf16.msra.mxu1 %v615_v51  ;;  %v669_v37 = vpop.permute.xlu0 %668  ;;  %p1243_p0 = scmp.ne.s32.totalorder %s1046_s26, %s1242_s27  ;;  %p1247_p1 = scmp.lt.s32.totalorder %s1046_s26, %s1046_s26 }
 0x196   :  { %v616_v4 = vpack.c.bf16 %v589_v1, %v588_v0  ;;  %v1161_v5 = vpop.f32.mrb[12].mxu0  ;;  %p1248_p2 = scmp.lt.s32.totalorder %s1246_s28, %s1242_s27 }
 0x197   :  { %v578_v6 = vadd.f32 %v1161_v5, %v557_v3  ;;  %v453_v7 = vpop.f32.mrb[13].mxu0  ;;  %v916_v38 = vpop.permute.xlu1 %915 }
 0x198   :  { %v576_v9 = vadd.f32 %v547_v48, %v453_v7  ;;  %v1162_v10 = vpop.f32.mrb[14].mxu0  ;;  %1171 = vmatprep.subr.bf16.mxu1 %v616_v4  ;;  %p1249_p3 = por %p1248_p2, %p1247_p1 }
 0x199   :  { %v579_v11 = vadd.f32 %v1162_v10, %v562_v8  ;;  %v456_v12 = vpop.f32.mrb[15].mxu0  ;;  %1172 = vmatpush3.bf16.msra.mxu1 %v616_v4  ;;  %v594_v14 = vmax.f32 %v578_v6, 0.0  ;;  %v674_v39 = vpop.permute.xlu0 %673 }
 0x19a   :  { %v577_v13 = vadd.f32 %v552_v60, %v456_v12  ;;  %1173 = vmatprep.subr.bf16.mxu1 %v617_v2  ;;  %v592_v16 = vmax.f32 %v576_v9, 0.0  ;;  %p1250_p4 = pnand %p1249_p3, %p1243_p0 }
 0x19b   :  { %v595_v15 = vmax.f32 %v579_v11, 0.0  ;;  %v921_v40 = vpop.permute.xlu1 %920 }
 0x19c   :  { %v593_v17 = vmax.f32 %v577_v13, 0.0 }
 0x19d   :  { %v619_v18 = vpack.c.bf16 %v595_v15, %v594_v14  ;;  %1174 = vmatpush3.bf16.msra.mxu1 %v617_v2  ;;  %v679_v41 = vpop.permute.xlu0 %678 }
 0x19e   :  { %v618_v19 = vpack.c.bf16 %v593_v17, %v592_v16 }
 0x19f   :  { %v926_v42 = vpop.permute.xlu1 %925 }
 0x1a0   :  { %1175 = vmatprep.subr.bf16.mxu1 %v618_v19 }
 0x1a1   :  { %1176 = vmatpush3.bf16.msra.mxu1 %v618_v19  ;;  %v1559_v43 = vpop.permute.xlu0 %683 }
 0x1a2   :  { %1177 = vmatprep.subr.bf16.mxu1 %v619_v18 }
 0x1a3   :  { %v931_v44 = vpop.permute.xlu1 %930 }
 0x1a5   :  { %1178 = vmatpush3.bf16.msra.mxu1 %v619_v18  ;;  %v689_v45 = vpop.permute.xlu0 %688 }
 0x1a7   :  { %v1561_v46 = vpop.permute.xlu1 %935 }
 0x1a8   :  { %1180 = vmatmul.mubr.bf16.vlgmr.msra.gmra.mrb[0].mxu1 %v1235_v20 }
 0x1a9   :  { %1183 = vmatprep.mubr.bf16.mxu1 %v1236_v21  ;;  %v694_v48 = vpop.permute.xlu0 %693 }
 0x1ab   :  { %v1563_v53 = vpop.permute.xlu1 %940 }
 0x1ad   :  { %v1565_v62 = vpop.permute.xlu0 %698 }
 0x1af   :  { %v946_v2 = vpop.permute.xlu1 %945 }
 0x1b0   :  { %1184 = vmatmul.mubr.bf16.gmra.mrb[4].mxu1 %v1237_v22 }
 0x1b1   :  { %1187 = vmatprep.mubr.bf16.mxu1 %v1238_v23  ;;  %v704_v17 = vpop.permute.xlu0 %703 }
 0x1b3   :  { %v951_v23 = vpop.permute.xlu1 %950 }
 0x1b8   :  { %1188 = vmatmul.mubr.bf16.gmra.mrb[8].mxu1 %v1239_v24 }
 0x1b9   :  { %1191 = vmatprep.mubr.bf16.mxu1 %v1240_v25 }
 0x1c0   :  { %1192 = vmatmul.mubr.bf16.gmra.mrb[12].mxu1 %v1241_v26 }
 0x27b   :  { %v1181_v47 = vpop.f32.mrb[0].mxu1 }
 0x27c   :  { %v807_v49 = vadd.f32 %v1181_v47, %v649_v29  ;;  %v798_v50 = vpop.f32.mrb[1].mxu1 }
 0x27d   :  { %v799_v51 = vadd.f32 %v798_v50, %v639_v27  ;;  %v1182_v52 = vpop.f32.mrb[2].mxu1 }
 0x27e   :  { %v810_v54 = vadd.f32 %v1182_v52, %v654_v30  ;;  %v801_v55 = vpop.f32.mrb[3].mxu1  ;;  %v863_v56 = vmax.f32 %v807_v49, 0.0 }
 0x27f   :  { %v861_v57 = vmax.f32 %v799_v51, 0.0  ;;  %v802_v58 = vadd.f32 %v801_v55, %v644_v28 }
 0x280   :  { %v864_v60 = vmax.f32 %v810_v54, 0.0  ;;  %v975_v63 = vmul.f32 %v906_v34, %v863_v56 }
 0x281   :  { %v973_v59 = vmul.f32 %v896_v32, %v861_v57  ;;  %v862_v61 = vmax.f32 %v802_v58, 0.0 }
 0x282   :  { %v976_v6 = vmul.f32 %v911_v36, %v864_v60  ;;  %v992_v13 = vsel %vm342_vm3, %v975_v63, 0.0  ;;  %v709_v36 = vpop.permute.xlu0 %708 }
 0x283   :  { %v974_v0 = vmul.f32 %v901_v33, %v862_v61  ;;  %v1185_v1 = vpop.f32.mrb[4].mxu1  ;;  %v989_v5 = vsel %vm342_vm3, %v973_v59, 0.0 }
 0x284   :  { %v823_v3 = vadd.f32 %v1185_v1, %v669_v37  ;;  %v814_v4 = vpop.f32.mrb[5].mxu1  ;;  %v994_v19 = vsel %vm342_vm3, %v976_v6, 0.0 }
 0x285   :  { %v990_v7 = vsel %vm342_vm3, %v974_v0, 0.0  ;;  %v815_v8 = vadd.f32 %v814_v4, %v659_v31  ;;  %v1186_v9 = vpop.f32.mrb[6].mxu1 }
 0x286   :  { %v991_v10 = vadd.f32 %v990_v7, %v989_v5  ;;  %v826_v11 = vadd.f32 %v1186_v9, %v674_v39  ;;  %v817_v12 = vpop.f32.mrb[7].mxu1  ;;  %v867_v14 = vmax.f32 %v823_v3, 0.0  ;;  %v714_v58 = vpop.permute.xlu0 %713 }
 0x287   :  { %v865_v15 = vmax.f32 %v815_v8, 0.0  ;;  %v818_v16 = vadd.f32 %v817_v12, %v664_v35 }
 0x288   :  { %v993_v18 = vadd.f32 %v992_v13, %v991_v10  ;;  %v868_v21 = vmax.f32 %v826_v11, 0.0  ;;  %v979_v25 = vmul.f32 %v926_v42, %v867_v14 }
 0x289   :  { %v977_v20 = vmul.f32 %v916_v38, %v865_v15  ;;  %v866_v22 = vmax.f32 %v818_v16, 0.0 }
 0x28a   :  { %v995_v24 = vadd.f32 %v994_v19, %v993_v18  ;;  %v980_v32 = vmul.f32 %v931_v44, %v868_v21  ;;  %v1000_v47 = vsel %vm342_vm3, %v979_v25, 0.0  ;;  %v966_v13 = vpop.permute.xlu0 %965  ;;  %v1032_v25 = vlaneseq }
 0x28b   :  { %v996_v26 = vsel %vm342_vm3, %v977_v20, 0.0  ;;  %v978_v27 = vmul.f32 %v921_v40, %v866_v22  ;;  %v1189_v28 = vpop.f32.mrb[8].mxu1  ;;  %v956_v40 = vpop.permute.xlu1 %955 }
 0x28c   :  { %v997_v29 = vadd.f32 %v996_v26, %v995_v24  ;;  %v839_v30 = vadd.f32 %v1189_v28, %v689_v45  ;;  %v830_v31 = vpop.f32.mrb[9].mxu1  ;;  %v1002_v45 = vsel %vm342_vm3, %v980_v32, 0.0  ;;  %v1033_v28 = vshrl.u32 %v1032_v25, 7 }
 0x28d   :  { %v998_v33 = vsel %vm342_vm3, %v978_v27, 0.0  ;;  %v831_v34 = vadd.f32 %v830_v31, %v679_v41  ;;  %v1190_v35 = vpop.f32.mrb[10].mxu1 }
 0x28e   :  { %v999_v37 = vadd.f32 %v998_v33, %v997_v29  ;;  %v842_v38 = vadd.f32 %v1190_v35, %v694_v48  ;;  %v833_v39 = vpop.f32.mrb[11].mxu1  ;;  %v871_v49 = vmax.f32 %v839_v30, 0.0  ;;  %v1034_v31 = vsub.s32 0, %v1033_v28  ;;  %v1030_v33 = vpop.permute.xlu0 %1029 }
 0x28f   :  { %v869_v42 = vmax.f32 %v831_v34, 0.0  ;;  %v834_v50 = vadd.f32 %v833_v39, %v1559_v43 }
 0x290   :  { %v1001_v51 = vadd.f32 %v1000_v47, %v999_v37  ;;  %v872_v52 = vmax.f32 %v842_v38, 0.0  ;;  %v983_v55 = vmul.f32 %v946_v2, %v871_v49  ;;  %v1035_v35 = vrot.slane %v1030_v33, %v1034_v31 }
 0x291   :  { %v981_v44 = vmul.f32 %v1561_v46, %v869_v42  ;;  %v870_v54 = vmax.f32 %v834_v50, 0.0  ;;  %v961_v46 = vpop.permute.xlu1 %960 }
 0x292   :  { %v1003_v41 = vadd.f32 %v1002_v45, %v1001_v51  ;;  %v984_v43 = vmul.f32 %v951_v23, %v872_v52  ;;  %v1008_v2 = vsel %vm342_vm3, %v983_v55, 0.0 }
 0x293   :  { %v1004_v56 = vsel %vm342_vm3, %v981_v44, 0.0  ;;  %v982_v48 = vmul.f32 %v1563_v53, %v870_v54  ;;  %v1193_v57 = vpop.f32.mrb[12].mxu1 }
 0x294   :  { %v1005_v59 = vadd.f32 %v1004_v56, %v1003_v41  ;;  %v855_v60 = vadd.f32 %v1193_v57, %v709_v36  ;;  %v846_v61 = vpop.f32.mrb[13].mxu1  ;;  %v1010_v9 = vsel %vm342_vm3, %v984_v43, 0.0 }
 0x295   :  { %v1006_v63 = vsel %vm342_vm3, %v982_v48, 0.0  ;;  %v847_v0 = vadd.f32 %v846_v61, %v1565_v62  ;;  %v1194_v1 = vpop.f32.mrb[14].mxu1  ;;  %v971_v18 = vpop.permute.xlu1 %970 }
 0x296   :  { %v1007_v3 = vadd.f32 %v1006_v63, %v1005_v59  ;;  %v858_v4 = vadd.f32 %v1194_v1, %v714_v58  ;;  %v849_v5 = vpop.f32.mrb[15].mxu1  ;;  %v875_v6 = vmax.f32 %v855_v60, 0.0 }
 0x297   :  { %v873_v7 = vmax.f32 %v847_v0, 0.0  ;;  %v850_v53 = vadd.f32 %v849_v5, %v704_v17 }
 0x298   :  { %v1009_v8 = vadd.f32 %v1008_v2, %v1007_v3  ;;  %v876_v11 = vmax.f32 %v858_v4, 0.0  ;;  %v987_v15 = vmul.f32 %v966_v13, %v875_v6 }
 0x299   :  { %v985_v10 = vmul.f32 %v956_v40, %v873_v7  ;;  %v874_v12 = vmax.f32 %v850_v53, 0.0 }
 0x29a   :  { %v1011_v14 = vadd.f32 %v1010_v9, %v1009_v8  ;;  %v988_v20 = vmul.f32 %v971_v18, %v876_v11  ;;  %v1016_v17 = vsel %vm342_vm3, %v987_v15, 0.0 }
 0x29b   :  { %v1012_v62 = vsel %vm342_vm3, %v985_v10, 0.0  ;;  %v986_v16 = vmul.f32 %v961_v46, %v874_v12 }
 0x29c   :  { %v1013_v19 = vadd.f32 %v1012_v62, %v1011_v14  ;;  %v1018_v24 = vsel %vm342_vm3, %v988_v20, 0.0 }
 0x29d   :  { %v1014_v21 = vsel %vm342_vm3, %v986_v16, 0.0 }
 0x29e   :  { %v1015_v22 = vadd.f32 %v1014_v21, %v1013_v19 }
 0x2a0   :  { %v1017_v23 = vadd.f32 %v1016_v17, %v1015_v22 }
 0x2a2   :  { %v1019_v26 = vadd.f32 %v1018_v24, %v1017_v23 }
 0x2a4   :  { %v1020_v27 = vrot.slane %v1019_v26, 4 }
 0x2a6   :  { %v1021_v29 = vadd.f32 %v1020_v27, %v1019_v26 }
 0x2a8   :  { %v1022_v30 = vrot.slane %v1021_v29, 2 }
 0x2aa   :  { %v1023_v32 = vadd.f32 %v1022_v30, %v1021_v29 }
 0x2ac   :  { %v1024_v34 = vrot.slane %v1023_v32, 1 }
 0x2ae   :  { %v1025_v36 = vadd.f32 %v1024_v34, %v1023_v32 }
 0x2b0   :  { %v1036_v37 = vadd.f32 %v1035_v35, %v1025_v36 }
 0x2b2   :  { %1038 = vst.msk [vmem:[#allocation3] sm:$0x1] %vm1037_vm4, %v1036_v37 }
 0x2b3   :  { %1253 = shalt.err (!%p1250_p4)
}
 0x2b4   :  { %s1254_s30 = scalar_lea.hbm %s1608_s9, 16 }
 0x2b5   :  { %p1255_p5 = scmp.ne.s32.totalorder %s1608_s9, %s1254_s30  ;;  %p1258_p6 = scmp.lt.u32.totalorder %s1254_s30, %s1608_s9 }
 0x2b7   :  { %p1260_p7 = pnand %p1258_p6, %p1255_p5 }
 0x2b9   :  { %1263 = shalt.err (!%p1260_p7)
}
 0x2ba   :  { %1048 = dma.vmem_to_hbm [thread:$0]  %s1046_s26, 16, %s1608_s9, [#allocation4]  }
 0x2bb   :  { %1264 = dma.done.wait [#allocation4], 16  }
 0x2bc   :  { %1265 = vsyncadd [#allocation4], 4294967280 }
 0x2bd   :  { %1052 = vsyncpa [#allocation4], 1 }

</bundles_post_ra>
